<compile_context>
chip_gen: v5e
topology: v5e:2x2
jax: 0.10.0
libtpu: 0.0.40
codegen_flags: <defaults>
</compile_context>

<pallas_src>
import functools

import jax
import jax.numpy as jnp
from jax.experimental import pallas as pl
from jax.experimental.pallas import tpu as pltpu

IN_FEATURES = 300
OUT_FEATURES = 26
K_PAD = 384    # 3 * 128  (lane / MXU-K aligned)
N_PAD = 128    # lane-dense output width


def _round_up(n, m):
    return ((n + m - 1) // m) * m


def linear_kernel(x_ref, wT_ref, b_ref, o_ref):
    # x_ref:  (TB, K_PAD)  bf16
    # wT_ref: (K_PAD, N_PAD) bf16   (VMEM-resident across grid steps)
    # b_ref:  (1, N_PAD)   f32
    # o_ref:  (TB, N_PAD)  f32
    acc = jnp.dot(x_ref[...], wT_ref[...],
                  preferred_element_type=jnp.float32)   # MXU, f32 accumulate
    o_ref[...] = acc + b_ref[...]                       # f32 bias add (VPU)


def prepare_params(weight, bias):
    """One-time parameter prep: transpose, pad to (K_PAD, N_PAD), cast to bf16.

    weight: (26, 300) f32, bias: (26,) f32.
    Returns (wT_pad (K_PAD, N_PAD) bf16, b_pad (1, N_PAD) f32).
    """
    wT = jnp.zeros((K_PAD, N_PAD), jnp.bfloat16)
    wT = wT.at[:IN_FEATURES, :OUT_FEATURES].set(weight.T.astype(jnp.bfloat16))
    b_pad = jnp.zeros((1, N_PAD), jnp.float32)
    b_pad = b_pad.at[0, :OUT_FEATURES].set(bias.astype(jnp.float32))
    return wT, b_pad


@functools.partial(jax.jit, static_argnames=("tile_b",))
def logistic_regression_forward(x, wT_pad, b_pad, *, tile_b=2048):
    """x: (B, 300) f32 -> (B, 26) f32. wT_pad/b_pad from prepare_params()."""
    B = x.shape[0]

    # Stream x in bf16 and pad K to 384 (lane-aligned).
    x_bf = x.astype(jnp.bfloat16)
    x_p = jnp.pad(x_bf, ((0, 0), (0, K_PAD - IN_FEATURES)))

    # Batch tile: large for pipelining, but never larger than the (8-aligned)
    # batch itself; pad B so the grid divides evenly.
    TB = min(tile_b, _round_up(B, 8))
    B_pad = _round_up(B, TB)
    if B_pad != B:
        x_p = jnp.pad(x_p, ((0, B_pad - B), (0, 0)))

    grid = (B_pad // TB,)

    out = pl.pallas_call(
        linear_kernel,
        out_shape=jax.ShapeDtypeStruct((B_pad, N_PAD), jnp.float32),
        grid=grid,
        in_specs=[
            pl.BlockSpec((TB, K_PAD), lambda i: (i, 0)),        # x: streamed
            pl.BlockSpec((K_PAD, N_PAD), lambda i: (0, 0)),     # W^T: resident
            pl.BlockSpec((1, N_PAD), lambda i: (0, 0)),         # bias: resident
        ],
        out_specs=pl.BlockSpec((TB, N_PAD), lambda i: (i, 0)),
        compiler_params=pltpu.CompilerParams(
            dimension_semantics=("parallel",),        # shards batch tiles on v7x
            vmem_limit_bytes=32 * 1024 * 1024,        # safe on v5e/v6e/v7x
        ),
    )(x_p, wT_pad, b_pad)

    # Drop batch padding and the lane padding of the output.
    return out[:B, :OUT_FEATURES]


if __name__ == "__main__":
    key = jax.random.PRNGKey(0)
    k_x, k_w, k_b = jax.random.split(key, 3)

    # Deterministic parameter init mirroring torch.nn.Linear's default
    # (uniform in [-1/sqrt(fan_in), 1/sqrt(fan_in)]).
    bound = 1.0 / (IN_FEATURES ** 0.5)
    weight = jax.random.uniform(
        k_w, (OUT_FEATURES, IN_FEATURES), jnp.float32, -bound, bound)
    bias = jax.random.uniform(
        k_b, (OUT_FEATURES,), jnp.float32, -bound, bound)

    # One-time parameter prep (hoisted out of the per-call path).
    wT_pad, b_pad = prepare_params(weight, bias)

    B = 8
    x = jax.random.normal(k_x, (B, IN_FEATURES), jnp.float32)

    out = logistic_regression_forward(x, wT_pad, b_pad)
    out = jax.block_until_ready(out)

    # Reference with the same bf16 input rounding (kernel streams x/W in bf16).
    x_bf = x.astype(jnp.bfloat16).astype(jnp.float32)
    w_bf = weight.astype(jnp.bfloat16).astype(jnp.float32)
    ref = x_bf @ w_bf.T + bias

    assert out.shape == (B, OUT_FEATURES)
    assert jnp.allclose(out, ref, atol=1e-2, rtol=1e-2), (
        float(jnp.max(jnp.abs(out - ref))))

    print("KERNEL_OK")
</pallas_src>

<mosaic_0001>
module attributes {stable_mosaic.version = 11 : i64} {
  func.func @linear_kernel(%arg0: i32, %arg1: memref<8x384xbf16, #tpu.memory_space<vmem>>, %arg2: memref<384x128xbf16, #tpu.memory_space<vmem>>, %arg3: memref<1x128xf32, #tpu.memory_space<vmem>>, %arg4: memref<8x128xf32, #tpu.memory_space<vmem>>) attributes {dimension_semantics = [#tpu.dimension_semantics<parallel>], iteration_bounds = array<i64: 1>, scalar_prefetch = 0 : i64, scratch_operands = 0 : i64, tpu.core_type = #tpu.core_type<tc>, window_params = [{transform_indices = @transform_0, window_bounds = array<i64: 8, 384>}, {pipeline_mode = #tpu.pipeline_mode<synchronous>, transform_indices = @transform_1, window_bounds = array<i64: 384, 128>}, {pipeline_mode = #tpu.pipeline_mode<synchronous>, transform_indices = @transform_2, window_bounds = array<i64: 1, 128>}, {transform_indices = @transform_3, window_bounds = array<i64: 8, 128>}]} {
    %c0 = arith.constant 0 : index
    %c0_0 = arith.constant 0 : index
    %0 = vector.load %arg1[%c0, %c0_0] : memref<8x384xbf16, #tpu.memory_space<vmem>>, vector<8x384xbf16>
    %c0_1 = arith.constant 0 : index
    %c0_2 = arith.constant 0 : index
    %1 = vector.load %arg2[%c0_1, %c0_2] : memref<384x128xbf16, #tpu.memory_space<vmem>>, vector<384x128xbf16>
    %cst = arith.constant dense<0.000000e+00> : vector<8x128xf32>
    %2 = tpu.matmul %0, %1, %cst {dimension_numbers = #tpu.dot_dimension_numbers<[1], [0], [0], [1], [0, 0, 1, 1], [], []>} : vector<8x384xbf16>, vector<384x128xbf16>, vector<8x128xf32> -> vector<8x128xf32>
    %c0_3 = arith.constant 0 : index
    %c0_4 = arith.constant 0 : index
    %3 = vector.load %arg3[%c0_3, %c0_4] : memref<1x128xf32, #tpu.memory_space<vmem>>, vector<1x128xf32>
    %4 = vector.broadcast %3 : vector<1x128xf32> to vector<8x128xf32>
    %5 = arith.addf %2, %4 : vector<8x128xf32>
    %c0_5 = arith.constant 0 : index
    %c0_6 = arith.constant 0 : index
    %6 = vector.load %arg4[%c0_5, %c0_6] : memref<8x128xf32, #tpu.memory_space<vmem>>, vector<8x128xf32>
    tpu.vector_store %arg4[%c0_5, %c0_6], %5 {strides = array<i32>} : memref<8x128xf32, #tpu.memory_space<vmem>>, vector<8x128xf32>,
    return
  }
  func.func @transform_0(%arg0: i32) -> (i32, i32) {
    %c0_i32 = arith.constant 0 : i32
    %c0_i32_0 = arith.constant 0 : i32
    return %arg0, %c0_i32 : i32, i32
  }
  func.func @transform_1(%arg0: i32) -> (i32, i32) {
    %c0_i32 = arith.constant 0 : i32
    %c0_i32_0 = arith.constant 0 : i32
    %c0_i32_1 = arith.constant 0 : i32
    return %c0_i32, %c0_i32_0 : i32, i32
  }
  func.func @transform_2(%arg0: i32) -> (i32, i32) {
    %c0_i32 = arith.constant 0 : i32
    %c0_i32_0 = arith.constant 0 : i32
    %c0_i32_1 = arith.constant 0 : i32
    return %c0_i32, %c0_i32_0 : i32, i32
  }
  func.func @transform_3(%arg0: i32) -> (i32, i32) {
    %c0_i32 = arith.constant 0 : i32
    %c0_i32_0 = arith.constant 0 : i32
    return %arg0, %c0_i32 : i32, i32
  }
}

</mosaic_0001>

<bundles_post_ra>
// kernel: logistic_regression_forward.1
= control target key start
LH: loop header
LB: loop body
LE: loop exit
PB: predicated region body
PF: predicated region fallthrough
CT: control target
= control target key end

     0   :  { %8 = vsyncpa [#allocation3], 0  ;;  %s513_s0 = inlined_call_operand.vmem [shape: bf16[8,384], index: 0, kind: input, shape index: {}]   ;;  %s514_s1 = inlined_call_operand.hbm [shape: bf16[384,128], index: 1, kind: input, shape index: {}]   ;;  %s515_s2 = inlined_call_operand.vmem [shape: f32[1,128], index: 2, kind: input, shape index: {}]   ;;  %s516_s3 = inlined_call_operand.hbm [shape: f32[8,128], index: 3, kind: output, shape index: {}]  }
   0x1   :  { %9 = vsyncpa [#allocation4], 0  ;;  %s16_s14 = sshll.u32 %s514_s1, 4  ;;  %s474_s15 = smov [#allocation2]   ;;  %s17_s14 = int_to_ptr.hbm [resolvable:$true] %s16_s14 }
   0x2   :  { %s18_s16 = sshll.u32 %s474_s15, 4  ;;  %s475_s17 = smov 64   ;;  %s19_s16 = int_to_ptr.vmem [resolvable:$true] %s18_s16 }
   0x3   :  { %s476_s18 = smov 4  }
   0x4   :  { %24 = dma.hbm_to_vmem [thread:$0]  %s17_s14, 3072, %s19_s16, [#allocation3], %s475_s17, %s475_s17, %s476_s18  }
   0x5   :  { %470 = dma.done.wait [#allocation3], 3072  }
   0x6   :  { %471 = vsyncadd [#allocation3], 4294964224  ;;  %v400_v0 = vld [vmem:[#allocation2 + $0x38] sm:$0xff]  ;;  %v399_v3 = vld [vmem:[#allocation2 + $0x30] sm:$0xff]  ;;  %s477_s23 = smov [#allocation5]   ;;  %s287_s27 = sshll.u32 %s516_s3, 4  ;;  %s288_s27 = int_to_ptr.hbm [resolvable:$true] %s287_s27 }
   0x7   :  { %v408_v1 = vld [vmem:[#allocation2 + $0x78] sm:$0xff]  ;;  %240 = vmatpush.bf16.msra.mxu0 %v400_v0  ;;  %v407_v4 = vld [vmem:[#allocation2 + $0x70] sm:$0xff]  ;;  %v398_v6 = vld [vmem:[#allocation2 + $0x28] sm:$0xff]  ;;  %s285_s24 = sshll.u32 %s477_s23, 4  ;;  %s286_s24 = int_to_ptr.vmem [resolvable:$true] %s285_s24 }
   0x8   :  { %v416_v2 = vld [vmem:[#allocation2 + $0xb8] sm:$0xff]  ;;  %253 = vmatpush.bf16.msra.mxu1 %v408_v1  ;;  %v415_v5 = vld [vmem:[#allocation2 + $0xb0] sm:$0xff]  ;;  %v406_v7 = vld [vmem:[#allocation2 + $0x68] sm:$0xff] }
   0x9   :  { %266 = vmatpush.bf16.msra.mxu2 %v416_v2  ;;  %v414_v8 = vld [vmem:[#allocation2 + $0xa8] sm:$0xff]  ;;  %v397_v9 = vld [vmem:[#allocation2 + $0x20] sm:$0xff]  ;;  %v396_v12 = vld [vmem:[#allocation2 + $0x18] sm:$0xff] }
   0xa   :  { %v405_v10 = vld [vmem:[#allocation2 + $0x60] sm:$0xff]  ;;  %v404_v13 = vld [vmem:[#allocation2 + $0x58] sm:$0xff]  ;;  %v395_v15 = vld [vmem:[#allocation2 + $0x10] sm:$0xff] }
   0xb   :  { %241 = vmatpush.bf16.msra.mxu0 %v399_v3  ;;  %v413_v11 = vld [vmem:[#allocation2 + $0xa0] sm:$0xff]  ;;  %v412_v14 = vld [vmem:[#allocation2 + $0x98] sm:$0xff]  ;;  %v403_v16 = vld [vmem:[#allocation2 + $0x50] sm:$0xff] }
   0xc   :  { %254 = vmatpush.bf16.msra.mxu1 %v407_v4  ;;  %v411_v17 = vld [vmem:[#allocation2 + $0x90] sm:$0xff]  ;;  %v394_v18 = vld [vmem:[#allocation2 + $0x8] sm:$0xff]  ;;  %v31_v20 = vld [vmem:[%s513_s0] sm:$0xff] }
   0xd   :  { %267 = vmatpush.bf16.msra.mxu2 %v415_v5  ;;  %v402_v19 = vld [vmem:[#allocation2 + $0x48] sm:$0xff]  ;;  %v87_v23 = vunpack.c.l.b16 %v31_v20  ;;  %v88_v24 = vunpack.c.h.b16 %v31_v20  ;;  %v393_v25 = vld [vmem:[#allocation2] sm:$0xff] }
   0xe   :  { %v410_v21 = vld [vmem:[#allocation2 + $0x88] sm:$0xff]  ;;  %v401_v26 = vld [vmem:[#allocation2 + $0x40] sm:$0xff] }
   0xf   :  { %242 = vmatpush.bf16.msra.mxu0 %v398_v6  ;;  %v32_v22 = vld [vmem:[%s513_s0 + $0x8] sm:$0xf]  ;;  %v409_v28 = vld [vmem:[#allocation2 + $0x80] sm:$0xff]  ;;  %v90_v29 = vpack.c.b16 %v87_v23, %v87_v23  ;;  %v91_v30 = vpack.c.b16 %v88_v24, %v88_v24 }
  0x10   :  { %255 = vmatpush.bf16.msra.mxu1 %v406_v7  ;;  %v89_v27 = vunpack.c.l.b16 %v32_v22  ;;  %v421_v32 = vld [vmem:[%s515_s2] ss:$0 sm:$0xff] }
  0x11   :  { %268 = vmatpush.bf16.msra.mxu2 %v414_v8 }
  0x12   :  { %v92_v31 = vpack.c.b16 %v89_v27, %v89_v27 }
  0x13   :  { %243 = vmatpush.bf16.msra.mxu0 %v397_v9 }
  0x14   :  { %256 = vmatpush.bf16.msra.mxu1 %v405_v10 }
  0x15   :  { %269 = vmatpush.bf16.msra.mxu2 %v413_v11 }
  0x17   :  { %244 = vmatpush.bf16.msra.mxu0 %v396_v12 }
  0x18   :  { %257 = vmatpush.bf16.msra.mxu1 %v404_v13 }
  0x19   :  { %270 = vmatpush.bf16.msra.mxu2 %v412_v14 }
  0x1b   :  { %245 = vmatpush.bf16.msra.mxu0 %v395_v15 }
  0x1c   :  { %258 = vmatpush.bf16.msra.mxu1 %v403_v16 }
  0x1d   :  { %271 = vmatpush.bf16.msra.mxu2 %v411_v17 }
  0x1f   :  { %246 = vmatpush.bf16.msra.mxu0 %v394_v18 }
  0x20   :  { %259 = vmatpush.bf16.msra.mxu1 %v402_v19 }
  0x21   :  { %272 = vmatpush.bf16.msra.mxu2 %v410_v21 }
  0x23   :  { %247 = vmatpush.bf16.msra.mxu0 %v393_v25 }
  0x24   :  { %260 = vmatpush.bf16.msra.mxu1 %v401_v26 }
  0x25   :  { %273 = vmatpush.bf16.msra.mxu2 %v409_v28 }
  0x26   :  { %248 = vmatmul.bf16.vlgmr.msra.gmra.mxu0 %v90_v29 }
  0x27   :  { %261 = vmatmul.bf16.vlgmr.msra.gmra.mxu1 %v91_v30 }
  0x28   :  { %274 = vmatmul.bf16.vlgmr.msra.gmra.mxu2 %v92_v31 }
  0xa3   :  { %v249_v33 = vpop.f32.mrf.mxu0 }
  0xa4   :  { %v262_v34 = vpop.f32.mrf.mxu1  ;;  %v250_v35 = vadd.f32 %v421_v32, %v249_v33 }
  0xa6   :  { %v263_v36 = vadd.f32 %v262_v34, %v250_v35 }
  0xab   :  { %v275_v37 = vpop.f32.mrf.mxu2  ;;  %v251_v39 = vpop.f32.mrf.mxu0 }
  0xac   :  { %v276_v38 = vadd.f32 %v275_v37, %v263_v36  ;;  %v264_v40 = vpop.f32.mrf.mxu1 }
  0xae   :  { %279 = vst [vmem:[#allocation5] sm:$0xff] %v276_v38 }
  0xaf   :  { %290 = dma.vmem_to_hbm [thread:$0]  %s286_s24, 128, %s288_s27, [#allocation4]  }
  0xb3   :  { %v277_v41 = vpop.f32.mrf.mxu2 }
  0xb4   :  { %472 = dma.done.wait [#allocation4], 128  }
  0xb5   :  { %473 = vsyncadd [#allocation4], 4294967168 }
  0xb6   :  { %295 = vsyncpa [#allocation3], 1 }
  0xb7   :  { %296 = vsyncpa [#allocation4], 1 }

</bundles_post_ra>
